<compile_context>
chip_gen: v6e
topology: v6e:2x2x1
jax: 0.10.0
libtpu: 0.0.40
codegen_flags: <defaults>
</compile_context>

<pallas_src>
import functools

import jax
import jax.numpy as jnp
from jax.experimental import pallas as pl
from jax.experimental.pallas import tpu as pltpu


_VMEM_LIMIT_BYTES = 32 * 1024 * 1024          # safe on v5e / v6e / v7x
_DEFAULT_RESIDENT_BYTES = 18 * 1024 * 1024    # whole-matrix-in-VMEM threshold
_TARGET_BLOCK_BYTES = 2 * 1024 * 1024         # ~2 MiB f32 row tiles (HBM roofline)


# ---------------------------------------------------------------------------
# Path 1: whole matrix resident in VMEM (single grid step, 1 read + 1 write)
# ---------------------------------------------------------------------------
def _resident_kernel(x_ref, o_ref, *, norm_lim):
    x = x_ref[...].astype(jnp.float32)
    norm_sq = jnp.sum(x * x, keepdims=True)                       # (1, 1)
    scale = jnp.where(norm_sq > norm_lim, jax.lax.rsqrt(norm_sq),
                      jnp.float32(1.0))
    o_ref[...] = (x * scale).astype(o_ref.dtype)


def _normalize_resident(x, *, norm_lim):
    M, N = x.shape
    kernel = functools.partial(_resident_kernel, norm_lim=norm_lim)
    # No grid / no specs: whole operands placed in VMEM.
    return pl.pallas_call(
        kernel,
        out_shape=jax.ShapeDtypeStruct((M, N), x.dtype),
        compiler_params=pltpu.CompilerParams(
            vmem_limit_bytes=_VMEM_LIMIT_BYTES),
    )(x)


# ---------------------------------------------------------------------------
# Path 2: streaming fused two-phase kernel (reduce phase, then scale phase)
# ---------------------------------------------------------------------------
def _streaming_kernel(x_ref, o_ref, acc_ref, scale_ref, *,
                      norm_lim, tm, total_rows):
    p = pl.program_id(0)        # 0 = reduce phase, 1 = scale phase
    j = pl.program_id(1)        # row-tile index
    last_j = pl.num_programs(1) - 1

    @pl.when(p == 0)
    def _reduce_phase():
        @pl.when(j == 0)
        def _():
            acc_ref[...] = jnp.zeros_like(acc_ref)

        x = x_ref[...].astype(jnp.float32)
        # Mask rows beyond the true matrix end (ragged-M support).
        row_ids = j * tm + jax.lax.broadcasted_iota(jnp.int32, (tm, 1), 0)
        x = jnp.where(row_ids < total_rows, x, 0.0)
        # Elementwise partial accumulation: pure VPU work in the hot loop;
        # the expensive cross-lane reduction is deferred to the epilogue.
        acc_ref[...] += x * x

        @pl.when(j == last_j)
        def _():
            norm_sq = jnp.sum(acc_ref[...], keepdims=True)        # (1, 1)
            scale_ref[...] = jnp.where(norm_sq > norm_lim,
                                       jax.lax.rsqrt(norm_sq),
                                       jnp.float32(1.0))

    @pl.when(p == 1)
    def _scale_phase():
        o_ref[...] = (x_ref[...].astype(jnp.float32)
                      * scale_ref[...]).astype(o_ref.dtype)


def _normalize_streaming(x, *, norm_lim, tm):
    M, N = x.shape
    num_tiles = pl.cdiv(M, tm)
    kernel = functools.partial(_streaming_kernel, norm_lim=norm_lim,
                               tm=tm, total_rows=M)
    return pl.pallas_call(
        kernel,
        out_shape=jax.ShapeDtypeStruct((M, N), x.dtype),
        grid_spec=pltpu.PrefetchScalarGridSpec(
            num_scalar_prefetch=0,
            grid=(2, num_tiles),
            in_specs=[pl.BlockSpec((tm, N), lambda p, j: (j, 0))],
            # Phase 0 pins the output block index at 0 (and never writes it),
            # so no garbage tiles get flushed to HBM; phase 1 writes every
            # block exactly once.
            out_specs=pl.BlockSpec((tm, N), lambda p, j: (j * p, 0)),
            scratch_shapes=[pltpu.VMEM((tm, N), jnp.float32),     # x*x accum
                            pltpu.VMEM((1, 1), jnp.float32)],     # scale
        ),
        compiler_params=pltpu.CompilerParams(
            # Both axes carry cross-iteration state (accumulator / scale).
            dimension_semantics=("arbitrary", "arbitrary"),
            vmem_limit_bytes=_VMEM_LIMIT_BYTES),
    )(x)


# ---------------------------------------------------------------------------
# Module-equivalent wrapper
# ---------------------------------------------------------------------------
def _choose_tm(M, N):
    """Row-tile size giving ~2 MiB f32 blocks, multiple of 8, capped at 1024."""
    rows = _TARGET_BLOCK_BYTES // max(1, N * 4)
    rows = max(8, (int(rows) // 8) * 8)
    rows = min(rows, 1024)
    padded_m = -(-M // 8) * 8
    return max(8, min(rows, padded_m))


def matrix_bothside(matrix_uv, norm_lim=1.0, *, tm=None,
                    max_resident_bytes=_DEFAULT_RESIDENT_BYTES):
    """JAX/Pallas equivalent of Matrix_bothside.forward (functional output)."""
    M, N = matrix_uv.shape
    itemsize = jnp.dtype(matrix_uv.dtype).itemsize
    # input buffer + f32 compute copy + output buffer
    resident_bytes = M * N * (2 * itemsize + 4)
    if resident_bytes <= max_resident_bytes:
        return _normalize_resident(matrix_uv, norm_lim=float(norm_lim))
    if tm is None:
        tm = _choose_tm(M, N)
    tm = max(8, (int(tm) + 7) // 8 * 8)
    # TODO(synk): on v7x, shard the phase-0 reduction across the 2 TensorCores
    # (needs a cross-core partial-sum combine); single-core streaming for now.
    return _normalize_streaming(matrix_uv, norm_lim=float(norm_lim), tm=tm)


# ---------------------------------------------------------------------------
# Self-test
# ---------------------------------------------------------------------------
def _reference(x, norm_lim):
    ns = jnp.sum(x.astype(jnp.float32) ** 2)
    return jnp.where(ns > norm_lim, x / jnp.sqrt(ns), x).astype(x.dtype)


if __name__ == "__main__":
    key = jax.random.PRNGKey(0)
    k1, k2 = jax.random.split(key)

    # 1) Small matrix -> fused fully-VMEM-resident path (rescale branch).
    x1 = jax.random.normal(k1, (64, 256), dtype=jnp.float32)
    out1 = jax.block_until_ready(matrix_bothside(x1, norm_lim=1.0))
    assert jnp.allclose(out1, _reference(x1, 1.0), rtol=1e-5, atol=1e-6), \
        "resident path mismatch"

    # 2) Ragged matrix forced through the streaming two-phase path:
    #    M=200 with tm=64 -> 4 row tiles, last one partial (tail masking).
    x2 = jax.random.normal(k2, (200, 384), dtype=jnp.float32)
    out2 = jax.block_until_ready(
        matrix_bothside(x2, norm_lim=1.0, tm=64, max_resident_bytes=0))
    assert jnp.allclose(out2, _reference(x2, 1.0), rtol=1e-5, atol=1e-6), \
        "streaming path mismatch"

    # 3) "No rescale" branch (norm_sq <= normLim) on both paths.
    x3 = x1 * 1e-4
    out3 = jax.block_until_ready(matrix_bothside(x3, norm_lim=1.0))
    assert jnp.allclose(out3, x3, rtol=1e-6, atol=1e-7), "resident no-op branch"

    x4 = x2 * 1e-4
    out4 = jax.block_until_ready(
        matrix_bothside(x4, norm_lim=1.0, tm=64, max_resident_bytes=0))
    assert jnp.allclose(out4, x4, rtol=1e-6, atol=1e-7), "streaming no-op branch"

    print("KERNEL_OK")
</pallas_src>

<mosaic_0001>
module attributes {stable_mosaic.version = 11 : i64} {
  func.func @_resident_kernel(%arg0: memref<64x256xf32, #tpu.memory_space<vmem>>, %arg1: memref<64x256xf32, #tpu.memory_space<vmem>>) attributes {dimension_semantics = [], scalar_prefetch = 0 : i64, scratch_operands = 0 : i64, tpu.core_type = #tpu.core_type<tc>} {
    %c0 = arith.constant 0 : index
    %c0_0 = arith.constant 0 : index
    %0 = vector.load %arg0[%c0, %c0_0] : memref<64x256xf32, #tpu.memory_space<vmem>>, vector<64x256xf32>
    %1 = arith.mulf %0, %0 : vector<64x256xf32>
    %2 = vector.shape_cast %1 : vector<64x256xf32> to vector<1x64x256xf32>
    %cst = arith.constant dense<0.000000e+00> : vector<1xf32>
    %3 = vector.multi_reduction <add>, %2, %cst [1, 2] : vector<1x64x256xf32> to vector<1xf32>
    %4 = vector.shape_cast %3 : vector<1xf32> to vector<1x1x1xf32>
    %5 = vector.extract %4[0, 0, 0] : f32 from vector<1x1x1xf32>
    %6 = vector.broadcast %5 : f32 to vector<1x1xf32>
    %cst_1 = arith.constant 1.000000e+00 : f32
    %7 = vector.broadcast %cst_1 : f32 to vector<1x1xf32>
    %8 = arith.cmpf ogt, %6, %7 : vector<1x1xf32>
    %9 = math.rsqrt %6 : vector<1x1xf32>
    %cst_2 = arith.constant 1.000000e+00 : f32
    %10 = vector.broadcast %cst_2 : f32 to vector<1x1xf32>
    %11 = arith.select %8, %9, %10 : vector<1x1xi1>, vector<1x1xf32>
    %12 = vector.broadcast %11 : vector<1x1xf32> to vector<64x256xf32>
    %13 = arith.mulf %0, %12 : vector<64x256xf32>
    %c0_3 = arith.constant 0 : index
    %c0_4 = arith.constant 0 : index
    %14 = vector.load %arg1[%c0_3, %c0_4] : memref<64x256xf32, #tpu.memory_space<vmem>>, vector<64x256xf32>
    tpu.vector_store %arg1[%c0_3, %c0_4], %13 {strides = array<i32>} : memref<64x256xf32, #tpu.memory_space<vmem>>, vector<64x256xf32>,
    return
  }
}

</mosaic_0001>

<bundles_post_ra>
// kernel: tpu_custom_call.1
= control target key start
LH: loop header
LB: loop body
LE: loop exit
PB: predicated region body
PF: predicated region fallthrough
CT: control target
= control target key end

     0   :  { %6 = vsyncpa [#allocation3], 0  ;;  %s210_s0 = inlined_call_operand.hbm [shape: f32[64,256], index: 0, kind: input, shape index: {}]   ;;  %s211_s1 = inlined_call_operand.hbm [shape: f32[64,256], index: 1, kind: output, shape index: {}]  }
   0x1   :  { %7 = vsyncpa [#allocation4], 0  ;;  %s184_s6 = smov [#allocation2]  }
   0x2   :  { %s13_s7 = sshll.u32 %s184_s6, 4  ;;  %s14_s7 = int_to_ptr.vmem [resolvable:$true] %s13_s7 }
   0x3   :  { %s148_s8 = scalar_lea.vmem %s14_s7, 2048  ;;  %p153_p1 = scmp.lt.s32.totalorder %s14_s7, %s14_s7 }
   0x4   :  { %p149_p0 = scmp.ne.s32.totalorder %s14_s7, %s148_s8  ;;  %p154_p2 = scmp.lt.s32.totalorder %s148_s8, %s148_s8 }
   0x6   :  { %p155_p3 = por %p154_p2, %p153_p1 }
   0x8   :  { %p156_p4 = pnand %p155_p3, %p149_p0 }
   0xa   :  { %159 = shalt.err (!%p156_p4)
}
   0xb   :  { %s185_s9 = smov 256   ;;  %s186_s10 = smov 16  }
   0xc   :  { %19 = dma.hbm_to_vmem [thread:$0]  %s210_s0, 2048, %s14_s7, [#allocation3], %s185_s9, %s185_s9, %s186_s10  }
   0xd   :  { %180 = dma.done.wait [#allocation3], 2048  }
   0xe   :  { %181 = vsyncadd [#allocation3], 4294965248  ;;  %v23_v0 = vld [vmem:[#allocation2] sm:$0xff]  ;;  %v24_v1 = vld [vmem:[#allocation2 + $0x8] sm:$0xff]  ;;  %s187_s13 = smov [#allocation5]  }
   0xf   :  { %v25_v2 = vld [vmem:[#allocation2 + $0x10] sm:$0xff]  ;;  %v26_v3 = vld [vmem:[#allocation2 + $0x18] sm:$0xff]  ;;  %v39_v4 = vmul.f32 %v23_v0, %v23_v0  ;;  %v40_v5 = vmul.f32 %v24_v1, %v24_v1  ;;  %v27_v7 = vld [vmem:[#allocation2 + $0x20] sm:$0xff]  ;;  %s120_s14 = sshll.u32 %s187_s13, 4  ;;  %s121_s14 = int_to_ptr.vmem [resolvable:$true] %s120_s14 }
  0x10   :  { %v41_v6 = vmul.f32 %v25_v2, %v25_v2  ;;  %v42_v8 = vmul.f32 %v26_v3, %v26_v3  ;;  %v28_v10 = vld [vmem:[#allocation2 + $0x28] sm:$0xff]  ;;  %v43_v11 = vmul.f32 %v27_v7, %v27_v7  ;;  %v29_v13 = vld [vmem:[#allocation2 + $0x30] sm:$0xff]  ;;  %v30_v16 = vld [vmem:[#allocation2 + $0x38] sm:$0xff]  ;;  %s160_s15 = scalar_lea.vmem %s121_s14, 2048  ;;  %p165_p6 = scmp.lt.s32.totalorder %s121_s14, %s121_s14 }
  0x11   :  { %v55_v9 = vadd.f32 %v40_v5, %v39_v4  ;;  %v44_v14 = vmul.f32 %v28_v10, %v28_v10  ;;  %v45_v17 = vmul.f32 %v29_v13, %v29_v13  ;;  %v31_v19 = vld [vmem:[#allocation2 + $0x40] sm:$0xff]  ;;  %v46_v20 = vmul.f32 %v30_v16, %v30_v16  ;;  %v32_v22 = vld [vmem:[#allocation2 + $0x48] sm:$0xff]  ;;  %v33_v25 = vld [vmem:[#allocation2 + $0x50] sm:$0xff]  ;;  %p161_p5 = scmp.ne.s32.totalorder %s121_s14, %s160_s15  ;;  %p166_p7 = scmp.lt.s32.totalorder %s160_s15, %s160_s15 }
  0x12   :  { %v47_v23 = vmul.f32 %v31_v19, %v31_v19  ;;  %v48_v26 = vmul.f32 %v32_v22, %v32_v22  ;;  %v34_v28 = vld [vmem:[#allocation2 + $0x58] sm:$0xff]  ;;  %v49_v29 = vmul.f32 %v33_v25, %v33_v25  ;;  %v35_v31 = vld [vmem:[#allocation2 + $0x60] sm:$0xff]  ;;  %v36_v34 = vld [vmem:[#allocation2 + $0x68] sm:$0xff] }
  0x13   :  { %v56_v12 = vadd.f32 %v55_v9, %v41_v6  ;;  %v50_v32 = vmul.f32 %v34_v28, %v34_v28  ;;  %v51_v35 = vmul.f32 %v35_v31, %v35_v31  ;;  %v37_v37 = vld [vmem:[#allocation2 + $0x70] sm:$0xff]  ;;  %v52_v38 = vmul.f32 %v36_v34, %v36_v34  ;;  %v38_v40 = vld [vmem:[#allocation2 + $0x78] sm:$0xff]  ;;  %p167_p8 = por %p166_p7, %p165_p6 }
  0x14   :  { %v53_v41 = vmul.f32 %v37_v37, %v37_v37  ;;  %v54_v43 = vmul.f32 %v38_v40, %v38_v40 }
  0x15   :  { %v57_v15 = vadd.f32 %v56_v12, %v42_v8  ;;  %p168_p9 = pnand %p167_p8, %p161_p5 }
  0x17   :  { %v58_v18 = vadd.f32 %v57_v15, %v43_v11 }
  0x19   :  { %v59_v21 = vadd.f32 %v58_v18, %v44_v14 }
  0x1b   :  { %v60_v24 = vadd.f32 %v59_v21, %v45_v17 }
  0x1d   :  { %v61_v27 = vadd.f32 %v60_v24, %v46_v20 }
  0x1f   :  { %v62_v30 = vadd.f32 %v61_v27, %v47_v23 }
  0x21   :  { %v63_v33 = vadd.f32 %v62_v30, %v48_v26 }
  0x23   :  { %v64_v36 = vadd.f32 %v63_v33, %v49_v29 }
  0x25   :  { %v65_v39 = vadd.f32 %v64_v36, %v50_v32 }
  0x27   :  { %v66_v42 = vadd.f32 %v65_v39, %v51_v35 }
  0x29   :  { %v67_v44 = vadd.f32 %v66_v42, %v52_v38 }
  0x2b   :  { %v68_v45 = vadd.f32 %v67_v44, %v53_v41 }
  0x2d   :  { %v69_v46 = vadd.f32 %v68_v45, %v54_v43 }
  0x2f   :  { %70 = vadd.xlane.f32.xlu0 %v69_v46 }
  0xb8   :  { %v71_v47 = vpop.xlane.xlu0 %70 }
  0xb9   :  { %v72_v48 = vrot.slane %v71_v47, 4 }
  0xbb   :  { %v73_v49 = vadd.f32 %v72_v48, %v71_v47 }
  0xbd   :  { %v74_v50 = vrot.slane %v73_v49, 2 }
  0xbf   :  { %v75_v51 = vadd.f32 %v74_v50, %v73_v49 }
  0xc1   :  { %v76_v52 = vrot.slane %v75_v51, 1 }
  0xc3   :  { %v77_v53 = vadd.f32 %v76_v52, %v75_v51 }
  0xc5   :  { %132 = vpush %v77_v53 }
  0xf6   :  { %s133_s0 = spop %132 }
  0xf7   :  { %v79_v54 = vstv %s133_s0 }
  0xf8   :  { %138 = vrsqrt.f32 %v79_v54  ;;  %vm80_vm0 = vcmp.gt.f32.partialorder %v79_v54, 1.0 }
 0x105   :  { %v139_v55 = vpop.eup %138 }
 0x106   :  { %v82_v56 = vsel %vm80_vm0, %v139_v55, 1.0 }
 0x107   :  { %v83_v57 = vmul.f32 %v82_v56, %v23_v0  ;;  %v84_v58 = vmul.f32 %v82_v56, %v24_v1  ;;  %v85_v59 = vmul.f32 %v82_v56, %v25_v2  ;;  %v86_v60 = vmul.f32 %v82_v56, %v26_v3 }
 0x108   :  { %v87_v61 = vmul.f32 %v82_v56, %v27_v7  ;;  %v88_v62 = vmul.f32 %v82_v56, %v28_v10  ;;  %v89_v63 = vmul.f32 %v82_v56, %v29_v13  ;;  %v90_v4 = vmul.f32 %v82_v56, %v30_v16 }
 0x109   :  { %v91_v5 = vmul.f32 %v82_v56, %v31_v19  ;;  %v92_v6 = vmul.f32 %v82_v56, %v32_v22  ;;  %v93_v8 = vmul.f32 %v82_v56, %v33_v25  ;;  %v94_v9 = vmul.f32 %v82_v56, %v34_v28  ;;  %99 = vst [vmem:[#allocation5] sm:$0xff] %v83_v57 }
 0x10a   :  { %100 = vst [vmem:[#allocation5 + $0x8] sm:$0xff] %v84_v58  ;;  %101 = vst [vmem:[#allocation5 + $0x10] sm:$0xff] %v85_v59  ;;  %v95_v11 = vmul.f32 %v82_v56, %v35_v31  ;;  %v96_v12 = vmul.f32 %v82_v56, %v36_v34  ;;  %v97_v0 = vmul.f32 %v82_v56, %v37_v37 }
 0x10b   :  { %102 = vst [vmem:[#allocation5 + $0x18] sm:$0xff] %v86_v60  ;;  %v98_v1 = vmul.f32 %v82_v56, %v38_v40  ;;  %103 = vst [vmem:[#allocation5 + $0x20] sm:$0xff] %v87_v61 }
 0x10c   :  { %104 = vst [vmem:[#allocation5 + $0x28] sm:$0xff] %v88_v62  ;;  %105 = vst [vmem:[#allocation5 + $0x30] sm:$0xff] %v89_v63 }
 0x10d   :  { %106 = vst [vmem:[#allocation5 + $0x38] sm:$0xff] %v90_v4  ;;  %107 = vst [vmem:[#allocation5 + $0x40] sm:$0xff] %v91_v5 }
 0x10e   :  { %108 = vst [vmem:[#allocation5 + $0x48] sm:$0xff] %v92_v6  ;;  %109 = vst [vmem:[#allocation5 + $0x50] sm:$0xff] %v93_v8 }
 0x10f   :  { %110 = vst [vmem:[#allocation5 + $0x58] sm:$0xff] %v94_v9  ;;  %111 = vst [vmem:[#allocation5 + $0x60] sm:$0xff] %v95_v11 }
 0x110   :  { %112 = vst [vmem:[#allocation5 + $0x68] sm:$0xff] %v96_v12  ;;  %113 = vst [vmem:[#allocation5 + $0x70] sm:$0xff] %v97_v0 }
 0x111   :  { %114 = vst [vmem:[#allocation5 + $0x78] sm:$0xff] %v98_v1 }
 0x112   :  { %171 = shalt.err (!%p168_p9)
}
 0x113   :  { %126 = dma.vmem_to_hbm [thread:$0]  %s121_s14, 2048, %s211_s1, [#allocation4], %s185_s9, %s185_s9, %s186_s10  }
 0x114   :  { %182 = dma.done.wait [#allocation4], 2048  }
 0x115   :  { %183 = vsyncadd [#allocation4], 4294965248 }
 0x116   :  { %130 = vsyncpa [#allocation3], 1 }
 0x117   :  { %131 = vsyncpa [#allocation4], 1 }

</bundles_post_ra>
